<compile_context>
chip_gen: v7x
topology: tpu7x:2x2x1
jax: 0.10.0
libtpu: 0.0.40
codegen_flags: <defaults>
</compile_context>

<pallas_src>
import jax
import jax.numpy as jnp
from jax.experimental import pallas as pl
from jax.experimental.pallas import tpu as pltpu

HIDDEN = 128  # fixed by the module definition


def dueling_kernel(x_ref, w1_ref, b1_ref, wh1_ref, bh1_ref, w2_ref, b2_ref, out_ref):
    # feature: ReLU(x @ W1 + b1) -> (TB, 128)
    h = jnp.dot(x_ref[...], w1_ref[...], preferred_element_type=jnp.float32) + b1_ref[...]
    h = jnp.maximum(h, 0.0)

    # fused head hidden layer: ReLU(h @ [wa1 | wv1] + [ba1 | bv1]) -> (TB, 256)
    hh = jnp.dot(h, wh1_ref[...], preferred_element_type=jnp.float32) + bh1_ref[...]
    hh = jnp.maximum(hh, 0.0)

    # fused + padded head output layer: (TB, 256) @ (256, out_cols) -> lane-dense slab
    #   cols [0:A]  = advantage head output
    #   col  [A]    = value head output
    #   cols [A+1:] = 0 (padding)
    out_ref[...] = (jnp.dot(hh, w2_ref[...], preferred_element_type=jnp.float32)
                    + b2_ref[...]).astype(out_ref.dtype)


def dueling_net_forward(x, params, *, block_b=512):
    B, num_inputs = x.shape
    A = params["wa2"].shape[1]
    out_cols = max(128, -(-(A + 1) // 128) * 128)  # lane-dense padded head width

    # ---- wrapper-side weight packing ----
    # fused head first layer: [wa1 | wv1] -> (128, 256), [ba1 | bv1] -> (1, 256)
    wh1 = jnp.concatenate([params["wa1"], params["wv1"]], axis=1)
    bh1 = jnp.concatenate([params["ba1"], params["bv1"]], axis=1)
    # fused + zero-padded head second layer: (256, out_cols)
    #   rows [0:128]   x cols [0:A] = wa2   (advantage output)
    #   rows [128:256] x col  [A]   = wv2   (value output)
    w2 = jnp.zeros((2 * HIDDEN, out_cols), jnp.float32)
    w2 = w2.at[:HIDDEN, :A].set(params["wa2"])
    w2 = w2.at[HIDDEN:, A:A + 1].set(params["wv2"])
    b2 = jnp.zeros((1, out_cols), jnp.float32)
    b2 = b2.at[:, :A].set(params["ba2"])
    b2 = b2.at[:, A:A + 1].set(params["bv2"])

    # ---- batch tiling (tile is a multiple of 8 sublanes; pad B if needed) ----
    tb = min(block_b, -(-B // 8) * 8)
    Bp = -(-B // tb) * tb
    xp = x if Bp == B else jnp.pad(x, ((0, Bp - B), (0, 0)))
    grid = (Bp // tb,)

    def full(shape):
        return pl.BlockSpec(shape, lambda i: (0, 0))  # VMEM-resident across the grid

    slab = pl.pallas_call(
        dueling_kernel,
        out_shape=jax.ShapeDtypeStruct((Bp, out_cols), jnp.float32),
        grid_spec=pltpu.PrefetchScalarGridSpec(
            num_scalar_prefetch=0,
            grid=grid,
            in_specs=[
                pl.BlockSpec((tb, num_inputs), lambda i: (i, 0)),    # x: tiled over batch
                full((num_inputs, HIDDEN)), full((1, HIDDEN)),       # w1, b1
                full((HIDDEN, 2 * HIDDEN)), full((1, 2 * HIDDEN)),   # [wa1|wv1], [ba1|bv1]
                full((2 * HIDDEN, out_cols)), full((1, out_cols)),   # fused/padded head2
            ],
            out_specs=pl.BlockSpec((tb, out_cols), lambda i: (i, 0)),
        ),
        compiler_params=pltpu.CompilerParams(
            dimension_semantics=("parallel",),
            vmem_limit_bytes=32 << 20,  # safe on v7x (64 MiB physical) and v5e/v6e
        ),
        cost_estimate=pl.CostEstimate(
            flops=2 * Bp * (num_inputs * HIDDEN
                            + HIDDEN * 2 * HIDDEN
                            + 2 * HIDDEN * out_cols),
            transcendentals=0,
            bytes_accessed=4 * (xp.size
                                + num_inputs * HIDDEN + HIDDEN
                                + HIDDEN * 2 * HIDDEN + 2 * HIDDEN
                                + 2 * HIDDEN * out_cols + out_cols
                                + Bp * out_cols),
        ),
    )(xp, params["w1"], params["b1"], wh1, bh1, w2, b2)

    # Epilogue: advantage.mean() is over the WHOLE (B, A) advantage matrix (matches the
    # PyTorch module), which couples all batch tiles, so it is computed here on the tiny
    # slab slice rather than inside the parallel grid.
    slab = slab[:B]
    adv = slab[:, :A]
    val = slab[:, A:A + 1]
    return val + adv - jnp.mean(adv)


def init_params(key, num_inputs, num_outputs):
    """Deterministic synthetic init (uniform, PyTorch-Linear-like scaling)."""
    ks = jax.random.split(key, 10)

    def lin(kw, kb, fan_in, fan_out):
        bound = 1.0 / jnp.sqrt(fan_in)
        w = jax.random.uniform(kw, (fan_in, fan_out), jnp.float32, -bound, bound)
        b = jax.random.uniform(kb, (1, fan_out), jnp.float32, -bound, bound)
        return w, b

    w1, b1 = lin(ks[0], ks[1], num_inputs, HIDDEN)
    wa1, ba1 = lin(ks[2], ks[3], HIDDEN, HIDDEN)
    wa2, ba2 = lin(ks[4], ks[5], HIDDEN, num_outputs)
    wv1, bv1 = lin(ks[6], ks[7], HIDDEN, HIDDEN)
    wv2, bv2 = lin(ks[8], ks[9], HIDDEN, 1)
    return dict(w1=w1, b1=b1, wa1=wa1, ba1=ba1, wa2=wa2, ba2=ba2,
                wv1=wv1, bv1=bv1, wv2=wv2, bv2=bv2)


def dueling_net_reference(x, p):
    """Pure-JAX reference of the PyTorch forward."""
    h = jax.nn.relu(x @ p["w1"] + p["b1"])
    adv = jax.nn.relu(h @ p["wa1"] + p["ba1"]) @ p["wa2"] + p["ba2"]
    val = jax.nn.relu(h @ p["wv1"] + p["bv1"]) @ p["wv2"] + p["bv2"]
    return val + adv - jnp.mean(adv)


if __name__ == "__main__":
    num_inputs = 16   # config.state_space_input
    num_outputs = 8   # config.action_num
    batch = 8

    key = jax.random.PRNGKey(0)
    k_params, k_x = jax.random.split(key)
    params = init_params(k_params, num_inputs, num_outputs)
    x = jax.random.normal(k_x, (batch, num_inputs), jnp.float32)

    out = dueling_net_forward(x, params)
    out = jax.block_until_ready(out)

    ref = dueling_net_reference(x, params)
    assert out.shape == (batch, num_outputs)
    assert jnp.allclose(out, ref, atol=1e-4, rtol=1e-4), "mismatch vs reference"

    print("KERNEL_OK")
</pallas_src>

<mosaic_0001>
module attributes {stable_mosaic.version = 11 : i64} {
  func.func @dueling_kernel(%arg0: i32, %arg1: memref<8x16xf32, #tpu.memory_space<vmem>>, %arg2: memref<16x128xf32, #tpu.memory_space<vmem>>, %arg3: memref<1x128xf32, #tpu.memory_space<vmem>>, %arg4: memref<128x256xf32, #tpu.memory_space<vmem>>, %arg5: memref<1x256xf32, #tpu.memory_space<vmem>>, %arg6: memref<256x128xf32, #tpu.memory_space<vmem>>, %arg7: memref<1x128xf32, #tpu.memory_space<vmem>>, %arg8: memref<8x128xf32, #tpu.memory_space<vmem>>) attributes {dimension_semantics = [#tpu.dimension_semantics<parallel>], iteration_bounds = array<i64: 1>, scalar_prefetch = 0 : i64, scratch_operands = 0 : i64, tpu.core_type = #tpu.core_type<tc>, window_params = [{transform_indices = @transform_0, window_bounds = array<i64: 8, 16>}, {pipeline_mode = #tpu.pipeline_mode<synchronous>, transform_indices = @transform_1, window_bounds = array<i64: 16, 128>}, {pipeline_mode = #tpu.pipeline_mode<synchronous>, transform_indices = @transform_2, window_bounds = array<i64: 1, 128>}, {pipeline_mode = #tpu.pipeline_mode<synchronous>, transform_indices = @transform_3, window_bounds = array<i64: 128, 256>}, {pipeline_mode = #tpu.pipeline_mode<synchronous>, transform_indices = @transform_4, window_bounds = array<i64: 1, 256>}, {pipeline_mode = #tpu.pipeline_mode<synchronous>, transform_indices = @transform_5, window_bounds = array<i64: 256, 128>}, {pipeline_mode = #tpu.pipeline_mode<synchronous>, transform_indices = @transform_6, window_bounds = array<i64: 1, 128>}, {transform_indices = @transform_7, window_bounds = array<i64: 8, 128>}]} {
    %c0 = arith.constant 0 : index
    %c0_0 = arith.constant 0 : index
    %0 = vector.load %arg1[%c0, %c0_0] : memref<8x16xf32, #tpu.memory_space<vmem>>, vector<8x16xf32>
    %c0_1 = arith.constant 0 : index
    %c0_2 = arith.constant 0 : index
    %1 = vector.load %arg2[%c0_1, %c0_2] : memref<16x128xf32, #tpu.memory_space<vmem>>, vector<16x128xf32>
    %cst = arith.constant dense<0.000000e+00> : vector<8x128xf32>
    %2 = tpu.matmul %0, %1, %cst {dimension_numbers = #tpu.dot_dimension_numbers<[1], [0], [0], [1], [0, 0, 1, 1], [], []>} : vector<8x16xf32>, vector<16x128xf32>, vector<8x128xf32> -> vector<8x128xf32>
    %c0_3 = arith.constant 0 : index
    %c0_4 = arith.constant 0 : index
    %3 = vector.load %arg3[%c0_3, %c0_4] : memref<1x128xf32, #tpu.memory_space<vmem>>, vector<1x128xf32>
    %4 = vector.broadcast %3 : vector<1x128xf32> to vector<8x128xf32>
    %5 = arith.addf %2, %4 : vector<8x128xf32>
    %cst_5 = arith.constant 0.000000e+00 : f32
    %6 = vector.broadcast %cst_5 : f32 to vector<8x128xf32>
    %7 = arith.maximumf %5, %6 : vector<8x128xf32>
    %c0_6 = arith.constant 0 : index
    %c0_7 = arith.constant 0 : index
    %8 = vector.load %arg4[%c0_6, %c0_7] : memref<128x256xf32, #tpu.memory_space<vmem>>, vector<128x256xf32>
    %cst_8 = arith.constant dense<0.000000e+00> : vector<8x256xf32>
    %9 = tpu.matmul %7, %8, %cst_8 {dimension_numbers = #tpu.dot_dimension_numbers<[1], [0], [0], [1], [0, 0, 1, 1], [], []>} : vector<8x128xf32>, vector<128x256xf32>, vector<8x256xf32> -> vector<8x256xf32>
    %c0_9 = arith.constant 0 : index
    %c0_10 = arith.constant 0 : index
    %10 = vector.load %arg5[%c0_9, %c0_10] : memref<1x256xf32, #tpu.memory_space<vmem>>, vector<1x256xf32>
    %11 = vector.broadcast %10 : vector<1x256xf32> to vector<8x256xf32>
    %12 = arith.addf %9, %11 : vector<8x256xf32>
    %cst_11 = arith.constant 0.000000e+00 : f32
    %13 = vector.broadcast %cst_11 : f32 to vector<8x256xf32>
    %14 = arith.maximumf %12, %13 : vector<8x256xf32>
    %c0_12 = arith.constant 0 : index
    %c0_13 = arith.constant 0 : index
    %15 = vector.load %arg6[%c0_12, %c0_13] : memref<256x128xf32, #tpu.memory_space<vmem>>, vector<256x128xf32>
    %cst_14 = arith.constant dense<0.000000e+00> : vector<8x128xf32>
    %16 = tpu.matmul %14, %15, %cst_14 {dimension_numbers = #tpu.dot_dimension_numbers<[1], [0], [0], [1], [0, 0, 1, 1], [], []>} : vector<8x256xf32>, vector<256x128xf32>, vector<8x128xf32> -> vector<8x128xf32>
    %c0_15 = arith.constant 0 : index
    %c0_16 = arith.constant 0 : index
    %17 = vector.load %arg7[%c0_15, %c0_16] : memref<1x128xf32, #tpu.memory_space<vmem>>, vector<1x128xf32>
    %18 = vector.broadcast %17 : vector<1x128xf32> to vector<8x128xf32>
    %19 = arith.addf %16, %18 : vector<8x128xf32>
    %c0_17 = arith.constant 0 : index
    %c0_18 = arith.constant 0 : index
    %20 = vector.load %arg8[%c0_17, %c0_18] : memref<8x128xf32, #tpu.memory_space<vmem>>, vector<8x128xf32>
    tpu.vector_store %arg8[%c0_17, %c0_18], %19 {strides = array<i32>} : memref<8x128xf32, #tpu.memory_space<vmem>>, vector<8x128xf32>,
    return
  }
  func.func @transform_0(%arg0: i32) -> (i32, i32) {
    %c0_i32 = arith.constant 0 : i32
    %c0_i32_0 = arith.constant 0 : i32
    return %arg0, %c0_i32 : i32, i32
  }
  func.func @transform_1(%arg0: i32) -> (i32, i32) {
    %c0_i32 = arith.constant 0 : i32
    %c0_i32_0 = arith.constant 0 : i32
    %c0_i32_1 = arith.constant 0 : i32
    return %c0_i32, %c0_i32_0 : i32, i32
  }
  func.func @transform_2(%arg0: i32) -> (i32, i32) {
    %c0_i32 = arith.constant 0 : i32
    %c0_i32_0 = arith.constant 0 : i32
    %c0_i32_1 = arith.constant 0 : i32
    return %c0_i32, %c0_i32_0 : i32, i32
  }
  func.func @transform_3(%arg0: i32) -> (i32, i32) {
    %c0_i32 = arith.constant 0 : i32
    %c0_i32_0 = arith.constant 0 : i32
    %c0_i32_1 = arith.constant 0 : i32
    return %c0_i32, %c0_i32_0 : i32, i32
  }
  func.func @transform_4(%arg0: i32) -> (i32, i32) {
    %c0_i32 = arith.constant 0 : i32
    %c0_i32_0 = arith.constant 0 : i32
    %c0_i32_1 = arith.constant 0 : i32
    return %c0_i32, %c0_i32_0 : i32, i32
  }
  func.func @transform_5(%arg0: i32) -> (i32, i32) {
    %c0_i32 = arith.constant 0 : i32
    %c0_i32_0 = arith.constant 0 : i32
    %c0_i32_1 = arith.constant 0 : i32
    return %c0_i32, %c0_i32_0 : i32, i32
  }
  func.func @transform_6(%arg0: i32) -> (i32, i32) {
    %c0_i32 = arith.constant 0 : i32
    %c0_i32_0 = arith.constant 0 : i32
    %c0_i32_1 = arith.constant 0 : i32
    return %c0_i32, %c0_i32_0 : i32, i32
  }
  func.func @transform_7(%arg0: i32) -> (i32, i32) {
    %c0_i32 = arith.constant 0 : i32
    %c0_i32_0 = arith.constant 0 : i32
    return %arg0, %c0_i32 : i32, i32
  }
}

</mosaic_0001>

<bundles_post_ra>
// kernel: tpu_custom_call.1
= control target key start
LH: loop header
LB: loop body
LE: loop exit
PB: predicated region body
PF: predicated region fallthrough
CT: control target
= control target key end

     0   :  { %12 = vsyncpa [#allocation3], 0  ;;  %s781_s0 = inlined_call_operand.hbm [shape: f32[8,16], index: 0, kind: input, shape index: {}]   ;;  %s782_s1 = inlined_call_operand.hbm [shape: f32[16,128], index: 1, kind: input, shape index: {}]   ;;  %s783_s2 = inlined_call_operand.vmem [shape: f32[1,128], index: 2, kind: input, shape index: {}]   ;;  %s784_s3 = inlined_call_operand.hbm [shape: f32[128,256], index: 3, kind: input, shape index: {}]   ;;  %s785_s4 = inlined_call_operand.vmem [shape: f32[1,256], index: 4, kind: input, shape index: {}]   ;;  %s786_s5 = inlined_call_operand.hbm [shape: f32[256,128], index: 5, kind: input, shape index: {}]   ;;  %s787_s6 = inlined_call_operand.vmem [shape: f32[1,128], index: 6, kind: input, shape index: {}]   ;;  %s788_s7 = inlined_call_operand.hbm [shape: f32[8,128], index: 7, kind: output, shape index: {}]  }
   0x1   :  { %13 = vsyncpa [#allocation6], 0 }
   0x2   :  { %14 = vsyncpa [#allocation9], 0 }
   0x3   :  { %15 = vsyncpa [#allocation4], 0  ;;  %s654_s24 = smov [#allocation5]   ;;  %s536_s28 = scalar_lea.hbm %s782_s1, 256 }
   0x4   :  { %s31_s25 = sshll.u32 %s654_s24, 4  ;;  %p537_p0 = scmp.ne.s32.totalorder %s782_s1, %s536_s28  ;;  %s32_s25 = int_to_ptr.vmem [resolvable:$true] %s31_s25 }
   0x5   :  { %p540_p1 = scmp.lt.u32.totalorder %s536_s28, %s782_s1 }
   0x7   :  { %p542_p2 = pnand %p540_p1, %p537_p0 }
   0x9   :  { %545 = shalt.err (!%p542_p2)
}
   0xa   :  { %s546_s10 = scalar_lea.vmem %s32_s25, 256  ;;  %p551_p4 = scmp.lt.s32.totalorder %s32_s25, %s32_s25 }
   0xb   :  { %p547_p3 = scmp.ne.s32.totalorder %s32_s25, %s546_s10  ;;  %p552_p5 = scmp.lt.s32.totalorder %s546_s10, %s546_s10 }
   0xd   :  { %p553_p6 = por %p552_p5, %p551_p4 }
   0xf   :  { %p554_p7 = pnand %p553_p6, %p547_p3 }
  0x11   :  { %557 = shalt.err (!%p554_p7)
}
  0x12   :  { %s655_s11 = smov 128   ;;  %s656_s12 = smov 8  }
  0x13   :  { %37 = dma.hbm_to_vmem [thread:$0]  %s782_s1, 256, %s32_s25, [#allocation6], %s655_s11, %s655_s11, %s656_s12  }
  0x14   :  { %s657_s15 = smov [#allocation2]   ;;  %s658_s17 = smov [#allocation7]  }
  0x15   :  { %s22_s16 = sshll.u32 %s657_s15, 4  ;;  %s45_s18 = sshll.u32 %s658_s17, 4  ;;  %s23_s16 = int_to_ptr.vmem [resolvable:$true] %s22_s16  ;;  %s46_s18 = int_to_ptr.vmem [resolvable:$true] %s45_s18 }
  0x16   :  { %s558_s21 = scalar_lea.hbm %s781_s0, 128 }
  0x17   :  { %p559_p8 = scmp.ne.s32.totalorder %s781_s0, %s558_s21  ;;  %p562_p9 = scmp.lt.u32.totalorder %s558_s21, %s781_s0 }
  0x19   :  { %p564_p10 = pnand %p562_p9, %p559_p8 }
  0x1b   :  { %567 = shalt.err (!%p564_p10)
}
  0x1c   :  { %s568_s1 = scalar_lea.vmem %s23_s16, 128  ;;  %p573_p12 = scmp.lt.s32.totalorder %s23_s16, %s23_s16 }
  0x1d   :  { %p569_p11 = scmp.ne.s32.totalorder %s23_s16, %s568_s1  ;;  %p574_p13 = scmp.lt.s32.totalorder %s568_s1, %s568_s1 }
  0x1f   :  { %p575_p0 = por %p574_p13, %p573_p12 }
  0x21   :  { %p576_p1 = pnand %p575_p0, %p569_p11 }
  0x23   :  { %579 = shalt.err (!%p576_p1)
}
  0x24   :  { %25 = dma.hbm_to_vmem [thread:$0]  %s781_s0, 128, %s23_s16, [#allocation3]  }
  0x25   :  { %s580_s30 = scalar_lea.hbm %s784_s3, 4096 }
  0x26   :  { %p581_p2 = scmp.ne.s32.totalorder %s784_s3, %s580_s30  ;;  %p584_p3 = scmp.lt.u32.totalorder %s580_s30, %s784_s3 }
  0x28   :  { %p586_p4 = pnand %p584_p3, %p581_p2 }
  0x2a   :  { %589 = shalt.err (!%p586_p4)
}
  0x2b   :  { %s590_s14 = scalar_lea.vmem %s46_s18, 4096  ;;  %p595_p6 = scmp.lt.s32.totalorder %s46_s18, %s46_s18 }
  0x2c   :  { %p591_p5 = scmp.ne.s32.totalorder %s46_s18, %s590_s14  ;;  %p596_p7 = scmp.lt.s32.totalorder %s590_s14, %s590_s14 }
  0x2e   :  { %p597_p8 = por %p596_p7, %p595_p6 }
  0x30   :  { %p598_p9 = pnand %p597_p8, %p591_p5 }
  0x32   :  { %601 = shalt.err (!%p598_p9)
}
  0x33   :  { %s659_s0 = smov 256   ;;  %s660_s15 = smov 16  }
  0x34   :  { %51 = dma.hbm_to_vmem [thread:$0]  %s784_s3, 4096, %s46_s18, [#allocation6], %s659_s0, %s659_s0, %s660_s15  }
  0x35   :  { %s661_s19 = smov [#allocation8]   ;;  %s602_s23 = scalar_lea.hbm %s786_s5, 4096 }
  0x36   :  { %s59_s20 = sshll.u32 %s661_s19, 4  ;;  %p603_p10 = scmp.ne.s32.totalorder %s786_s5, %s602_s23  ;;  %s60_s20 = int_to_ptr.vmem [resolvable:$true] %s59_s20 }
  0x37   :  { %p606_p11 = scmp.lt.u32.totalorder %s602_s23, %s786_s5 }
  0x39   :  { %p608_p12 = pnand %p606_p11, %p603_p10 }
  0x3b   :  { %611 = shalt.err (!%p608_p12)
}
  0x3c   :  { %s612_s27 = scalar_lea.vmem %s60_s20, 4096  ;;  %p617_p0 = scmp.lt.s32.totalorder %s60_s20, %s60_s20 }
  0x3d   :  { %p613_p13 = scmp.ne.s32.totalorder %s60_s20, %s612_s27  ;;  %p618_p1 = scmp.lt.s32.totalorder %s612_s27, %s612_s27 }
  0x3f   :  { %p619_p2 = por %p618_p1, %p617_p0 }
  0x41   :  { %p620_p3 = pnand %p619_p2, %p613_p13 }
  0x43   :  { %623 = shalt.err (!%p620_p3)
}
  0x44   :  { %65 = dma.hbm_to_vmem [thread:$0]  %s786_s5, 4096, %s60_s20, [#allocation9], %s655_s11, %s655_s11, %s656_s12  }
  0x45   :  { %646 = dma.done.wait [#allocation3], 128  }
  0x46   :  { %647 = vsyncadd [#allocation3], 4294967168 }
  0x47   :  { %648 = dma.done.wait [#allocation6], 4352  }
  0x48   :  { %649 = vsyncadd [#allocation6], 4294962944 }
  0x49   :  { %650 = dma.done.wait [#allocation9], 4096  }
  0x4a   :  { %651 = vsyncadd [#allocation9], 4294963200  ;;  %v662_v0 = vmov 0.0|0.0   ;;  %vm663_vm0 = vmmov 0   ;;  %v664_v1 = vmov 0.0   ;;  %v81_v2 = vld [vmem:[#allocation5] sm:$0xff] }
  0x4b   :  { %457 = vmatprep.subr.bf16.mxu0 %v662_v0  ;;  %454 = vmatprep.mubr.msk.f32.mxu0 %vm663_vm0, %v664_v1  ;;  %v82_v3 = vld [vmem:[#allocation5 + $0x8] sm:$0xff]  ;;  %v80_v5 = vld [vmem:[#allocation2] sm:$0xff]  ;;  %v165_v8 = vld [vmem:[#allocation7] sm:$0xff]  ;;  %vm90_vm1 = vcmask 130048   ;;  %s665_s30 = smov [#allocation10]  }
  0x4c   :  { %273 = vmatprep.mubr.f32.mxu1 %v664_v1  ;;  %v458_v4 = vpack.c.bf16 %v82_v3, %v81_v2  ;;  %v166_v6 = vld [vmem:[#allocation7 + $0x8] sm:$0xff]  ;;  %v168_v7 = vld [vmem:[#allocation7 + $0x18] sm:$0xff]  ;;  %v167_v10 = vld [vmem:[#allocation7 + $0x10] sm:$0xff]  ;;  %s398_s8 = sshll.u32 %s665_s30, 4  ;;  %s399_s8 = int_to_ptr.vmem [resolvable:$true] %s398_s8 }
  0x4d   :  { %v460_v9 = vpack.c.bf16 %v168_v7, %v166_v6  ;;  %v170_v11 = vld [vmem:[#allocation7 + $0x28] sm:$0xff]  ;;  %v172_v12 = vld [vmem:[#allocation7 + $0x38] sm:$0xff]  ;;  %v462_v13 = vpack.c.bf16 %v167_v10, %v165_v8  ;;  %v169_v15 = vld [vmem:[#allocation7 + $0x20] sm:$0xff]  ;;  %p629_p5 = scmp.lt.s32.totalorder %s399_s8, %s399_s8 }
  0x4e   :  { %459 = vmatpush3.bf16.msra.mxu0 %v458_v4  ;;  %v464_v14 = vpack.c.bf16 %v172_v12, %v170_v11  ;;  %v171_v16 = vld [vmem:[#allocation7 + $0x30] sm:$0xff]  ;;  %v174_v17 = vld [vmem:[#allocation7 + $0x48] sm:$0xff]  ;;  %v176_v18 = vld [vmem:[#allocation7 + $0x58] sm:$0xff] }
  0x4f   :  { %461 = vmatprep.subr.bf16.mxu1 %v460_v9  ;;  %v466_v19 = vpack.c.bf16 %v171_v16, %v169_v15  ;;  %v468_v20 = vpack.c.bf16 %v176_v18, %v174_v17  ;;  %v173_v21 = vld [vmem:[#allocation7 + $0x40] sm:$0xff]  ;;  %v175_v22 = vld [vmem:[#allocation7 + $0x50] sm:$0xff]  ;;  %v178_v23 = vld [vmem:[#allocation7 + $0x68] sm:$0xff] }
  0x50   :  { %463 = vmatpush1.bf16.msra.mxu1 %v462_v13  ;;  %v180_v24 = vld [vmem:[#allocation7 + $0x78] sm:$0xff]  ;;  %v470_v25 = vpack.c.bf16 %v175_v22, %v173_v21  ;;  %v177_v27 = vld [vmem:[#allocation7 + $0x60] sm:$0xff]  ;;  %v179_v28 = vld [vmem:[#allocation7 + $0x70] sm:$0xff] }
  0x51   :  { %455 = vmatmul.mubr.msk.f32.vlgmr.msra.gmra.mrb[0].mxu0 %vm90_vm1, %v80_v5  ;;  %465 = vmatprep.subr.bf16.mxu1 %v464_v14  ;;  %v472_v26 = vpack.c.bf16 %v180_v24, %v178_v23  ;;  %v182_v29 = vld [vmem:[#allocation7 + $0x88] sm:$0xff]  ;;  %v184_v30 = vld [vmem:[#allocation7 + $0x98] sm:$0xff]  ;;  %v474_v31 = vpack.c.bf16 %v179_v28, %v177_v27  ;;  %v181_v33 = vld [vmem:[#allocation7 + $0x80] sm:$0xff] }
  0x52   :  { %v476_v32 = vpack.c.bf16 %v184_v30, %v182_v29  ;;  %v183_v34 = vld [vmem:[#allocation7 + $0x90] sm:$0xff]  ;;  %v186_v35 = vld [vmem:[#allocation7 + $0xa8] sm:$0xff]  ;;  %v188_v36 = vld [vmem:[#allocation7 + $0xb8] sm:$0xff] }
  0x53   :  { %v478_v37 = vpack.c.bf16 %v183_v34, %v181_v33  ;;  %v480_v38 = vpack.c.bf16 %v188_v36, %v186_v35  ;;  %v185_v39 = vld [vmem:[#allocation7 + $0xa0] sm:$0xff]  ;;  %v187_v40 = vld [vmem:[#allocation7 + $0xb0] sm:$0xff]  ;;  %v190_v41 = vld [vmem:[#allocation7 + $0xc8] sm:$0xff] }
  0x54   :  { %467 = vmatpush1.bf16.msra.mxu1 %v466_v19  ;;  %v192_v42 = vld [vmem:[#allocation7 + $0xd8] sm:$0xff]  ;;  %v482_v43 = vpack.c.bf16 %v187_v40, %v185_v39  ;;  %v189_v45 = vld [vmem:[#allocation7 + $0xc0] sm:$0xff]  ;;  %v191_v46 = vld [vmem:[#allocation7 + $0xd0] sm:$0xff] }
  0x55   :  { %469 = vmatprep.subr.bf16.mxu1 %v468_v20  ;;  %v484_v44 = vpack.c.bf16 %v192_v42, %v190_v41  ;;  %v486_v47 = vpack.c.bf16 %v191_v46, %v189_v45  ;;  %v194_v48 = vld [vmem:[#allocation7 + $0xe8] sm:$0xff]  ;;  %v196_v49 = vld [vmem:[#allocation7 + $0xf8] sm:$0xff]  ;;  %v193_v51 = vld [vmem:[#allocation7 + $0xe0] sm:$0xff] }
  0x56   :  { %v488_v50 = vpack.c.bf16 %v196_v49, %v194_v48  ;;  %v195_v52 = vld [vmem:[#allocation7 + $0xf0] sm:$0xff]  ;;  %v298_v54 = vld [vmem:[#allocation8 + $0x80] sm:$0xff]  ;;  %v299_v55 = vld [vmem:[#allocation8 + $0x88] sm:$0xff] }
  0x57   :  { %v490_v53 = vpack.c.bf16 %v195_v52, %v193_v51  ;;  %v282_v56 = vld [vmem:[#allocation8] sm:$0xff]  ;;  %v492_v57 = vpack.c.bf16 %v299_v55, %v298_v54  ;;  %v283_v58 = vld [vmem:[#allocation8 + $0x8] sm:$0xff]  ;;  %v300_v59 = vld [vmem:[#allocation8 + $0x90] sm:$0xff] }
  0x58   :  { %471 = vmatpush1.bf16.msra.mxu1 %v470_v25  ;;  %v301_v60 = vld [vmem:[#allocation8 + $0x98] sm:$0xff]  ;;  %v494_v61 = vpack.c.bf16 %v283_v58, %v282_v56  ;;  %v284_v63 = vld [vmem:[#allocation8 + $0x10] sm:$0xff]  ;;  %v302_v1 = vld [vmem:[#allocation8 + $0xa0] sm:$0xff] }
  0x59   :  { %473 = vmatprep.subr.bf16.mxu1 %v472_v26  ;;  %v496_v62 = vpack.c.bf16 %v301_v60, %v300_v59  ;;  %v285_v0 = vld [vmem:[#allocation8 + $0x18] sm:$0xff]  ;;  %493 = vmatprep.subr.bf16.mxu0 %v492_v57  ;;  %v303_v2 = vld [vmem:[#allocation8 + $0xa8] sm:$0xff]  ;;  %v286_v5 = vld [vmem:[#allocation8 + $0x20] sm:$0xff] }
  0x5a   :  { %495 = vmatpush3.bf16.msra.mxu0 %v494_v61  ;;  %v498_v3 = vpack.c.bf16 %v285_v0, %v284_v63  ;;  %v500_v4 = vpack.c.bf16 %v303_v2, %v302_v1  ;;  %v287_v6 = vld [vmem:[#allocation8 + $0x28] sm:$0xff]  ;;  %v304_v7 = vld [vmem:[#allocation8 + $0xb0] sm:$0xff]  ;;  %v305_v8 = vld [vmem:[#allocation8 + $0xb8] sm:$0xff] }
  0x5b   :  { %497 = vmatprep.subr.bf16.mxu0 %v496_v62  ;;  %v502_v9 = vpack.c.bf16 %v287_v6, %v286_v5  ;;  %v504_v10 = vpack.c.bf16 %v305_v8, %v304_v7  ;;  %v288_v11 = vld [vmem:[#allocation8 + $0x30] sm:$0xff]  ;;  %v289_v12 = vld [vmem:[#allocation8 + $0x38] sm:$0xff]  ;;  %v306_v13 = vld [vmem:[#allocation8 + $0xc0] sm:$0xff] }
  0x5c   :  { %475 = vmatpush1.bf16.msra.mxu1 %v474_v31  ;;  %v307_v14 = vld [vmem:[#allocation8 + $0xc8] sm:$0xff]  ;;  %v506_v15 = vpack.c.bf16 %v289_v12, %v288_v11  ;;  %v290_v17 = vld [vmem:[#allocation8 + $0x40] sm:$0xff]  ;;  %v308_v19 = vld [vmem:[#allocation8 + $0xd0] sm:$0xff] }
  0x5d   :  { %477 = vmatprep.subr.bf16.mxu1 %v476_v32  ;;  %v508_v16 = vpack.c.bf16 %v307_v14, %v306_v13  ;;  %v291_v18 = vld [vmem:[#allocation8 + $0x48] sm:$0xff]  ;;  %v309_v20 = vld [vmem:[#allocation8 + $0xd8] sm:$0xff]  ;;  %v292_v23 = vld [vmem:[#allocation8 + $0x50] sm:$0xff] }
  0x5e   :  { %499 = vmatpush3.bf16.msra.mxu0 %v498_v3  ;;  %v510_v21 = vpack.c.bf16 %v291_v18, %v290_v17  ;;  %v512_v22 = vpack.c.bf16 %v309_v20, %v308_v19  ;;  %v293_v24 = vld [vmem:[#allocation8 + $0x58] sm:$0xff]  ;;  %v310_v25 = vld [vmem:[#allocation8 + $0xe0] sm:$0xff]  ;;  %v311_v26 = vld [vmem:[#allocation8 + $0xe8] sm:$0xff] }
  0x5f   :  { %501 = vmatprep.subr.bf16.mxu0 %v500_v4  ;;  %v514_v27 = vpack.c.bf16 %v293_v24, %v292_v23  ;;  %v516_v28 = vpack.c.bf16 %v311_v26, %v310_v25  ;;  %v409_v29 = vld [vmem:[%s783_s2] ss:$0 sm:$0xff]  ;;  %v294_v34 = vld [vmem:[#allocation8 + $0x60] sm:$0xff]  ;;  %v296_v40 = vld [vmem:[#allocation8 + $0x70] sm:$0xff] }
  0x60   :  { %479 = vmatpush1.bf16.msra.mxu1 %v478_v37  ;;  %v295_v35 = vld [vmem:[#allocation8 + $0x68] sm:$0xff]  ;;  %v312_v37 = vld [vmem:[#allocation8 + $0xf0] sm:$0xff]  ;;  %v297_v41 = vld [vmem:[#allocation8 + $0x78] sm:$0xff] }
  0x61   :  { %481 = vmatprep.subr.bf16.mxu1 %v480_v38  ;;  %v518_v36 = vpack.c.bf16 %v295_v35, %v294_v34  ;;  %v313_v38 = vld [vmem:[#allocation8 + $0xf8] sm:$0xff]  ;;  %v522_v42 = vpack.c.bf16 %v297_v41, %v296_v40  ;;  %v197_v46 = vld [vmem:[%s785_s4] sm:$0x3]  ;;  %s624_s4 = scalar_lea.vmem %s399_s8, 128 }
  0x62   :  { %503 = vmatpush3.bf16.msra.mxu0 %v502_v9  ;;  %v520_v39 = vpack.c.bf16 %v313_v38, %v312_v37  ;;  %v411_v57 = vld [vmem:[%s787_s6] ss:$0 sm:$0xff]  ;;  %p625_p4 = scmp.ne.s32.totalorder %s399_s8, %s624_s4  ;;  %p630_p6 = scmp.lt.s32.totalorder %s624_s4, %s624_s4 }
  0x63   :  { %505 = vmatprep.subr.bf16.mxu0 %v504_v10 }
  0x64   :  { %483 = vmatpush1.bf16.msra.mxu1 %v482_v43  ;;  %v199_v43 = vlaneseq  ;;  %p631_p7 = por %p630_p6, %p629_p5 }
  0x65   :  { %485 = vmatprep.subr.bf16.mxu1 %v484_v44 }
  0x66   :  { %507 = vmatpush3.bf16.msra.mxu0 %v506_v15  ;;  %v200_v44 = vshrl.u32 %v199_v43, 7  ;;  %p632_p8 = pnand %p631_p7, %p625_p4 }
  0x67   :  { %509 = vmatprep.subr.bf16.mxu0 %v508_v16 }
  0x68   :  { %487 = vmatpush1.bf16.msra.mxu1 %v486_v47  ;;  %v201_v45 = vsub.s32 0, %v200_v44  ;;  %v205_v47 = vsub.s32 1, %v200_v44 }
  0x69   :  { %489 = vmatprep.subr.bf16.mxu1 %v488_v50 }
  0x6a   :  { %511 = vmatpush3.bf16.msra.mxu0 %v510_v21  ;;  %v202_v48 = vrot.slane %v197_v46, %v201_v45  ;;  %v206_v49 = vrot.slane %v197_v46, %v205_v47 }
  0x6b   :  { %513 = vmatprep.subr.bf16.mxu0 %v512_v22 }
  0x6c   :  { %491 = vmatpush1.bf16.msra.mxu1 %v490_v53 }
  0x6e   :  { %515 = vmatpush3.bf16.msra.mxu0 %v514_v27 }
  0x6f   :  { %517 = vmatprep.subr.bf16.mxu0 %v516_v28 }
  0x72   :  { %519 = vmatpush3.bf16.msra.mxu0 %v518_v36 }
  0x73   :  { %521 = vmatprep.subr.bf16.mxu0 %v520_v39 }
  0x76   :  { %523 = vmatpush3.bf16.msra.mxu0 %v522_v42 }
 0x124   :  { %v160_v30 = vpop.f32.mrb[0].mxu0 }
 0x125   :  { %v161_v31 = vadd.f32 %v409_v29, %v160_v30  ;;  %v456_v32 = vpop.f32.mrb[1].mxu0 }
 0x127   :  { %v164_v33 = vmax.f32 %v161_v31, 0.0 }
 0x129   :  { %274 = vmatmul.mubr.f32.vlgmr.msra.gmra.mrb[0].mxu1 %v164_v33 }
 0x1fc   :  { %v275_v50 = vpop.f32.mrb[0].mxu1 }
 0x1fd   :  { %v276_v51 = vadd.f32 %v275_v50, %v202_v48  ;;  %v277_v52 = vpop.f32.mrb[1].mxu1 }
 0x1fe   :  { %v278_v53 = vadd.f32 %v277_v52, %v206_v49 }
 0x1ff   :  { %v280_v55 = vmax.f32 %v276_v51, 0.0 }
 0x200   :  { %v281_v54 = vmax.f32 %v278_v53, 0.0 }
 0x202   :  { %385 = vmatprep.mubr.f32.mxu0 %v281_v54 }
 0x203   :  { %386 = vmatmul.mubr.f32.vlgmr.msra.gmra.mrb[2].mxu0 %v280_v55 }
 0x2d6   :  { %v447_v56 = vpop.f32.mrb[2].mxu0 }
 0x2d7   :  { %v448_v58 = vpop.f32.mrb[3].mxu0 }
 0x2d8   :  { %v449_v59 = vadd.f32 %v448_v58, %v447_v56 }
 0x2da   :  { %v388_v60 = vadd.f32 %v449_v59, %v411_v57 }
 0x2dc   :  { %391 = vst [vmem:[#allocation10] sm:$0xff] %v388_v60 }
 0x2dd   :  { %635 = shalt.err (!%p632_p8)
}
 0x2de   :  { %s636_s13 = scalar_lea.hbm %s788_s7, 128 }
 0x2df   :  { %p637_p9 = scmp.ne.s32.totalorder %s788_s7, %s636_s13  ;;  %p640_p10 = scmp.lt.u32.totalorder %s636_s13, %s788_s7 }
 0x2e1   :  { %p642_p11 = pnand %p640_p10, %p637_p9 }
 0x2e3   :  { %645 = shalt.err (!%p642_p11)
}
 0x2e4   :  { %401 = dma.vmem_to_hbm [thread:$0]  %s399_s8, 128, %s788_s7, [#allocation4]  }
 0x2e5   :  { %652 = dma.done.wait [#allocation4], 128  }
 0x2e6   :  { %653 = vsyncadd [#allocation4], 4294967168 }
 0x2e7   :  { %405 = vsyncpa [#allocation3], 1 }
 0x2e8   :  { %406 = vsyncpa [#allocation6], 1 }
 0x2e9   :  { %407 = vsyncpa [#allocation9], 1 }
 0x2ea   :  { %408 = vsyncpa [#allocation4], 1 }

</bundles_post_ra>
